<compile_context>
chip_gen: v7x
topology: tpu7x:2x2x1
jax: 0.10.0
libtpu: 0.0.40
codegen_flags: <defaults>
</compile_context>

<pallas_src>
import numpy as np
import jax
import jax.numpy as jnp
from jax.experimental import pallas as pl
from jax.experimental.pallas import tpu as pltpu


def make_product_layer_indices(num, copies, partitions):
    """Reproduces ProductLayer.__init__ index construction (static, NumPy)."""
    assert num == copies * partitions
    ch_copies = int(np.round(np.sqrt(copies)))
    y = np.arange(num)
    group = y // copies
    offset = y % copies
    ch1 = group * (2 * ch_copies) + offset // ch_copies
    ch2 = group * (2 * ch_copies) + ch_copies + offset % ch_copies
    return ch1.astype(np.int32), ch2.astype(np.int32)


def _round_up(x, m):
    return ((x + m - 1) // m) * m


def _vmem_budget_bytes():
    """~75% of this generation's VMEM capacity (v5e/v6e 128 MiB, v7x 64 MiB/TC),
    with a conservative 48 MiB fallback valid on every generation."""
    cap = None
    try:
        cap = getattr(pltpu.get_tpu_info(), "vmem_capacity_bytes", None)
    except Exception:
        cap = None
    if not cap:
        cap = 64 << 20
    return (int(cap) * 3) // 4


def _choose_tiles(batch, child_num, num, budget, bytes_per_elem=4):
    """Lane-aware tile selection.

    VMEM footprint model (f32, double-buffered by the BlockSpec pipeline):
      x tile   : tb x round_up(child_num, 128)
      out tile : tb x round_up(tn, 128)
      M tile   : round_up(child_num, 8) x round_up(tn, 128)
    """
    c_lanes = _round_up(child_num, 128)
    m_rows = _round_up(child_num, 8)
    n_full = _round_up(num, 128)

    # Column (num) tile: keep the full width unless M (double-buffered) would
    # eat more than ~1/4 of the budget; then tile in 128-lane multiples.
    m_full_bytes = 2 * m_rows * n_full * bytes_per_elem
    if num < 128 or m_full_bytes <= budget // 4:
        tn = num                      # single tile == full dim (layout-legal)
    else:
        tn = ((budget // 4) // (2 * m_rows * bytes_per_elem)) // 128 * 128
        tn = int(max(128, min(tn, (num // 128) * 128)))
    tn_lanes = _round_up(tn, 128)

    fixed = 2 * m_rows * tn_lanes * bytes_per_elem              # resident M (2 bufs)
    per_row = 2 * (c_lanes + tn_lanes) * bytes_per_elem         # x + out, 2 bufs each

    if batch <= 8:
        tb = batch                    # full-extent tile (exempt from 8-rule)
    else:
        tb = (budget - fixed) // per_row
        tb = int(max(8, min(tb, 8192, batch)))
        tb = (tb // 8) * 8
    return int(tb), int(tn)


def _product_layer_kernel(x_ref, m_ref, o_ref):
    # out[b, i] = sum_j x[b, j] * M[j, i]  ==  x[b, ch1[i]] + x[b, ch2[i]]
    o_ref[...] = jnp.dot(
        x_ref[...], m_ref[...], preferred_element_type=jnp.float32
    ).astype(o_ref.dtype)


def product_layer_forward(x, ch1, ch2, num):
    """Pallas implementation of ProductLayer.forward.

    x   : (batch, child_num) float32
    ch1 : (num,) static int indices into child_num
    ch2 : (num,) static int indices into child_num
    returns (batch, num) with out[b, i] = x[b, ch1[i]] + x[b, ch2[i]]
    """
    batch, child_num = x.shape
    ch1 = np.asarray(ch1)
    ch2 = np.asarray(ch2)
    assert ch1.shape == (num,) and ch2.shape == (num,)
    assert int(max(ch1.max(), ch2.max())) < child_num, (
        "ch1/ch2 indices exceed child_num; copies is likely not a perfect square")

    # Static one-hot selection matrix.  No lane padding: the kernel writes
    # exactly `num` columns (lane-density inside the tile is a layout detail).
    m = np.zeros((child_num, num), dtype=np.float32)
    m[ch1, np.arange(num)] += 1.0
    m[ch2, np.arange(num)] += 1.0
    m = jnp.asarray(m)

    budget = _vmem_budget_bytes()
    tb, tn = _choose_tiles(batch, child_num, num, budget)
    grid = (pl.cdiv(batch, tb), pl.cdiv(num, tn))

    cost = pl.CostEstimate(
        flops=2 * batch * child_num * num,
        transcendentals=0,
        bytes_accessed=4 * (batch * child_num + child_num * num + batch * num),
    )

    out = pl.pallas_call(
        _product_layer_kernel,
        out_shape=jax.ShapeDtypeStruct((batch, num), x.dtype),
        grid_spec=pltpu.PrefetchScalarGridSpec(
            num_scalar_prefetch=0,
            grid=grid,
            in_specs=[
                # x marches over batch only -> resident across the inner num
                # axis; last dim equals the full array dim (exempt from 128).
                pl.BlockSpec((tb, child_num), lambda b, n: (b, 0)),
                # M marches over the num axis only; for typical layer widths a
                # single resident tile (constant block index -> no re-DMA).
                pl.BlockSpec((child_num, tn), lambda b, n: (0, n)),
            ],
            out_specs=pl.BlockSpec((tb, tn), lambda b, n: (b, n)),
        ),
        compiler_params=pltpu.CompilerParams(
            # Batch steps independent -> TC sharding where available.
            dimension_semantics=("parallel", "arbitrary"),
            vmem_limit_bytes=int(budget),
        ),
        cost_estimate=cost,
    )(x, m)
    return out


if __name__ == "__main__":
    # Small configuration consistent with the module invariant
    # num = copies * partitions; child layer feeds partitions * 2 * ch_copies units.
    partitions = 4
    copies = 16                  # ch_copies = 4 (perfect square)
    num = copies * partitions    # 64
    ch_copies = int(np.round(np.sqrt(copies)))
    child_num = partitions * 2 * ch_copies   # 32
    batch = 10                   # not a multiple of 8: exercises the partial
                                 # edge tile (no host-side padding, no slice)

    ch1, ch2 = make_product_layer_indices(num, copies, partitions)

    key = jax.random.PRNGKey(0)
    x = jax.random.normal(key, (batch, child_num), dtype=jnp.float32)

    out = jax.block_until_ready(product_layer_forward(x, ch1, ch2, num))

    # Pure-NumPy reference of the PyTorch forward.
    x_np = np.asarray(x)
    ref = x_np[:, ch1] + x_np[:, ch2]

    assert out.shape == (batch, num), out.shape
    np.testing.assert_allclose(np.asarray(out), ref, rtol=1e-6, atol=1e-6)

    print("KERNEL_OK")
</pallas_src>

<mosaic_0001>
module attributes {stable_mosaic.version = 11 : i64} {
  func.func @_product_layer_kernel(%arg0: i32, %arg1: i32, %arg2: memref<8x32xf32, #tpu.memory_space<vmem>>, %arg3: memref<32x64xf32, #tpu.memory_space<vmem>>, %arg4: memref<8x64xf32, #tpu.memory_space<vmem>>) attributes {dimension_semantics = [#tpu.dimension_semantics<parallel>, #tpu.dimension_semantics<arbitrary>], iteration_bounds = array<i64: 2, 1>, scalar_prefetch = 0 : i64, scratch_operands = 0 : i64, tpu.core_type = #tpu.core_type<tc>, window_params = [{transform_indices = @transform_0, window_bounds = array<i64: 8, 32>}, {transform_indices = @transform_1, window_bounds = array<i64: 32, 64>}, {transform_indices = @transform_2, window_bounds = array<i64: 8, 64>}]} {
    %c0 = arith.constant 0 : index
    %c0_0 = arith.constant 0 : index
    %0 = vector.load %arg2[%c0, %c0_0] : memref<8x32xf32, #tpu.memory_space<vmem>>, vector<8x32xf32>
    %c0_1 = arith.constant 0 : index
    %c0_2 = arith.constant 0 : index
    %1 = vector.load %arg3[%c0_1, %c0_2] : memref<32x64xf32, #tpu.memory_space<vmem>>, vector<32x64xf32>
    %cst = arith.constant dense<0.000000e+00> : vector<8x64xf32>
    %2 = tpu.matmul %0, %1, %cst {dimension_numbers = #tpu.dot_dimension_numbers<[1], [0], [0], [1], [0, 0, 1, 1], [], []>} : vector<8x32xf32>, vector<32x64xf32>, vector<8x64xf32> -> vector<8x64xf32>
    %c0_3 = arith.constant 0 : index
    %c0_4 = arith.constant 0 : index
    %3 = vector.load %arg4[%c0_3, %c0_4] : memref<8x64xf32, #tpu.memory_space<vmem>>, vector<8x64xf32>
    tpu.vector_store %arg4[%c0_3, %c0_4], %2 {strides = array<i32>} : memref<8x64xf32, #tpu.memory_space<vmem>>, vector<8x64xf32>,
    return
  }
  func.func @transform_0(%arg0: i32, %arg1: i32) -> (i32, i32) {
    %c0_i32 = arith.constant 0 : i32
    %c0_i32_0 = arith.constant 0 : i32
    return %arg0, %c0_i32 : i32, i32
  }
  func.func @transform_1(%arg0: i32, %arg1: i32) -> (i32, i32) {
    %c0_i32 = arith.constant 0 : i32
    %c0_i32_0 = arith.constant 0 : i32
    return %c0_i32, %arg1 : i32, i32
  }
  func.func @transform_2(%arg0: i32, %arg1: i32) -> (i32, i32) {
    %c0_i32 = arith.constant 0 : i32
    return %arg0, %arg1 : i32, i32
  }
}

</mosaic_0001>

<bundles_post_ra>
// kernel: tpu_custom_call.1
= control target key start
LH: loop header
LB: loop body
LE: loop exit
PB: predicated region body
PF: predicated region fallthrough
CT: control target
= control target key end

     0   :  { %7 = vsyncpa [#allocation3], 0  ;;  %s881_s0 = inlined_call_operand.hbm [shape: f32[10,32], index: 0, kind: input, shape index: {}]   ;;  %s882_s1 = inlined_call_operand.hbm [shape: f32[32,64], index: 1, kind: input, shape index: {}]   ;;  %s883_s2 = inlined_call_operand.hbm [shape: f32[10,64], index: 2, kind: output, shape index: {}]  }
   0x1   :  { %9 = vsyncpa [#allocation3 + $0x1], 0 }
   0x2   :  { %10 = vsyncpa [#allocation6], 0 }
   0x3   :  { %11 = vsyncpa [#allocation4], 0 }
   0x4   :  { %13 = vsyncpa [#allocation4 + $0x1], 0  ;;  %s667_s9 = smov 0   ;;  %s669_s10 = smov 0  }
   0x5   :  { %s671_s11 = smov 0   ;;  %s673_s12 = smov 0  }
   0x6   :  { %s675_s13 = smov 0   ;;  %s677_s14 = smov 0  }
   0x7 LB: > { %s382_s15 = sadd.s32 4294967295, %s642_s14   ;;  %s383_s16 = sadd.s32 4294967294, %s642_s14   ;;  %s642_s14 = sphi %s677_s14, %s19_s14   ;;  %s638_s13 = sphi %s675_s13, %s907_s13   ;;  %s634_s12 = sphi %s673_s12, %s906_s12   ;;  %s630_s11 = sphi %s671_s11, %s905_s11   ;;  %s626_s10 = sphi %s669_s10, %s904_s10   ;;  %s622_s9 = sphi %s667_s9, %s903_s9  }
   0x8   : > { %p51_p0 = scmp.ne.s32.totalorder %s626_s10, %s622_s9  ;;  %p701_p1 = scmp.eq.s32.totalorder %s382_s15, 0 }
   0x9   : > { %p705_p2 = scmp.eq.s32.totalorder %s382_s15, 1  ;;  %p109_p3 = scmp.eq.s32.totalorder %s383_s16, 1 }
   0xa   : > { %s888_s17 = scalar_select %p701_p1, 1, 0 }
   0xb   : > { %s889_s18 = scalar_select %p705_p2, 1, 0 }
   0xc   : > { %p711_p4 = por %p701_p1, %p51_p0  ;;  %p384_p5 = scmp.ge.s32.totalorder %s642_s14, 1 }
   0xd   : > { %p716_p6 = por %p109_p3, %p51_p0  ;;  %p116_p7 = scmp.lt.s32.totalorder %s642_s14, 3 }
   0xe   : > { %s890_s19 = scalar_select %p711_p4, 1, 0 }
   0xf   : > { %s891_s20 = scalar_select %p716_p6, 1, 0 }
  0x10   : > { %p721_p8 = pnand %p384_p5, %p116_p7  ;;  %s644_s22 = smov [#allocation5]  }
  0x11   : > { %s130_s23 = sshll.u32 %s644_s22, 4  ;;  %s31_s25 = sadd.s32 1, %s638_s13  ;;  %s131_s23 = int_to_ptr.vmem [resolvable:$true] %s130_s23 }
  0x12   : > { %s892_s21 = scalar_select %p721_p8, 1, 0 }
  0x13   : > { %p428_p9 = pneg %p721_p8  ;;  %s498_s28 = scalar_lea.hbm %s882_s1, 512 }
  0x14   : > { %p499_p12 = scmp.ne.s32.totalorder %s882_s1, %s498_s28  ;;  %p505_p5 = scmp.lt.u32.totalorder %s498_s28, %s882_s1 }
  0x15   : > { %p730_p11 = pnand %p428_p9, %p701_p1 }
  0x17   : > { %p500_p13 = pneg %p730_p11 }
  0x19   : > { %p501_p0 = pnand %p500_p13, %p499_p12 }
  0x1b   : > { %p502_p3 = pneg %p501_p0 }
  0x1d   : > { %p507_p7 = pnand %p505_p5, %p502_p3 }
  0x1f   : > { %510 = shalt.err (!%p507_p7)
}
  0x20   : > { %s511_s5 = scalar_lea.vmem %s131_s23, 512  ;;  %p519_p1 = scmp.lt.s32.totalorder %s131_s23, %s131_s23 }
  0x21   : > { %p512_p9 = scmp.ne.s32.totalorder %s131_s23, %s511_s5  ;;  %p520_p4 = scmp.lt.s32.totalorder %s511_s5, %s511_s5 }
  0x23   : > { %p514_p10 = pnand %p512_p9, %p500_p13  ;;  %p521_p8 = por %p520_p4, %p519_p1 }
  0x25   : > { %p515_p6 = pneg %p514_p10 }
  0x27   : > { %p522_p2 = pnand %p521_p8, %p515_p6 }
  0x29   : > { %525 = shalt.err (!%p522_p2)
}
  0x2a   : > { %s645_s6 = smov 128   ;;  %s646_s7 = smov 8  }
  0x2b   : > { %431 = dma.hbm_to_vmem [thread:$0]  (!%p730_p11), %s882_s1, 512, %s131_s23, [#allocation6], %s645_s6, %s645_s6, %s646_s7  }
  0x2c   : > { %p33_p1 = scmp.ge.s32.totalorder %s31_s25, 2  ;;  %s38_s16 = sadd.s32 1, %s630_s11 }
  0x2d   : > { %p45_p2 = scmp.ne.s32.totalorder %s630_s11, %s626_s10  ;;  %p46_p4 = scmp.eq.s32.totalorder %s642_s14, 0 }
  0x2e   : > { %s909_s25 = smov (%p33_p1, %s31_s25), 0  ;;  %p895_p8 = scmp.ne.s32.totalorder %s889_s18, 0 }
  0x2f   : > { %p757_p6 = por %p46_p4, %p45_p2  ;;  %s35_s24 = ssub.s32 %s638_s13, %s909_s25 }
  0x30   : > { %p763_p10 = por %p895_p8, %p45_p2  ;;  %p441_p12 = scmp.lt.s32.totalorder %s642_s14, 2 }
  0x31   : > { %p36_p11 = scmp.eq.s32.totalorder %s35_s24, 0  ;;  %s144_s23 = sand.u32 1, %s630_s11  }
  0x32   : > { %s387_s27 = sshll.u32 %s144_s23, 3  ;;  %s388_s29 = sshll.u32 %s638_s13, 7 }
  0x33   : > { %s772_s28 = scalar_select %p36_p11, %s630_s11, %s38_s16  }
  0x34   : > { %s778_s4 = scalar_lea.hbm %s881_s0, %s388_s29  ;;  %s148_s18 = scalar_lea.vmem [#allocation2], %s387_s27 }
  0x35   : > { %s155_s5 = sshll.u32 %s148_s18, 4  ;;  %p784_p13 = pnand %p441_p12, %p757_p6  ;;  %s780_s5 = int_to_ptr.vmem [resolvable:$true] %s155_s5 }
  0x36   : > { %s145_s7 = scalar_lea.sflag [#allocation3], %s144_s23  ;;  %s526_s8 = scalar_lea.hbm %s778_s4, 128 }
  0x37   : > { %p527_p0 = scmp.ne.s32.totalorder %s778_s4, %s526_s8  ;;  %p528_p3 = pneg %p784_p13 }
  0x38   : > { %s531_s24 = scalar_lea.hbm %s881_s0, 256  ;;  %p532_p9 = scmp.lt.u32.totalorder %s778_s4, %s881_s0 }
  0x39   : > { %p529_p5 = pnand %p528_p3, %p527_p0  ;;  %p533_p1 = scmp.lt.u32.totalorder %s531_s24, %s526_s8 }
  0x3a   : > { %p535_p4 = scmp.lt.u32.totalorder %s526_s8, %s778_s4 }
  0x3b   : > { %p530_p7 = pneg %p529_p5  ;;  %p534_p2 = por %p533_p1, %p532_p9 }
  0x3d   : > { %p536_p6 = por %p535_p4, %p534_p2 }
  0x3f   : > { %p537_p8 = pnand %p536_p6, %p530_p7 }
  0x41   : > { %540 = shalt.err (!%p537_p8)
}
  0x42   : > { %s541_s23 = scalar_lea.vmem %s780_s5, 128  ;;  %s647_s29 = smov [#allocation2]  }
  0x43   : > { %p542_p12 = scmp.ne.s32.totalorder %s780_s5, %s541_s23  ;;  %s546_s30 = sshll.u32 %s647_s29, 4  ;;  %s547_s30 = int_to_ptr.vmem [resolvable:$false] %s546_s30 }
  0x44   : > { %s548_s3 = scalar_lea.vmem %s547_s30, 256  ;;  %p549_p5 = scmp.lt.s32.totalorder %s780_s5, %s547_s30 }
  0x45   : > { %p544_p11 = pnand %p542_p12, %p528_p3  ;;  %p550_p9 = scmp.lt.s32.totalorder %s548_s3, %s541_s23 }
  0x47   : > { %p545_p0 = pneg %p544_p11  ;;  %p551_p1 = por %p550_p9, %p549_p5 }
  0x49   : > { %p552_p2 = pnand %p551_p1, %p545_p0 }
  0x4b   : > { %555 = shalt.err (!%p552_p2)
}
  0x4c   : > { %435 = dma.hbm_to_vmem [thread:$0]  (!%p784_p13), %s778_s4, 128, %s780_s5, %s145_s7  }
  0x4d   : > { %p898_p7 = scmp.ne.s32.totalorder %s892_s21, 0 }
  0x4e   : > { %s816_s18 = sand.u32 (!%p898_p7), 1, %s626_s10   ;;  %p899_p3 = scmp.ne.s32.totalorder (!%p898_p7), %s890_s19, 0 }
  0x4f   : > { %164 = sbr.rel (%p898_p7) target bundleno = 327 (0x147), region = 28  ;;  %s390_s8 = sshll.u32 (!%p898_p7), %s816_s18, 3 }
  0x50   : > { %s167_s15 = scalar_lea.sflag (!%p898_p7), [#allocation3], %s816_s18  ;;  %s170_s16 = scalar_lea.vmem (!%p898_p7), [#allocation2], %s390_s8 }
  0x56   : > { %609 = dma.done.wait (%p899_p3), %s167_s15, 128  }
  0x57   : > { %611 = vsyncadd (%p899_p3), %s167_s15, 4294967168  ;;  %p900_p4 = scmp.ne.s32.totalorder %s888_s17, 0 }
  0x59   : > { %613 = dma.done.wait (%p900_p4), [#allocation6], 512  }
  0x5a   : > { %615 = vsyncadd (%p900_p4), [#allocation6], 4294966784  ;;  %v648_v0 = vmov 0.0|0.0   ;;  %vm649_vm0 = vmmov 0   ;;  %v650_v1 = vmov 0.0   ;;  %v196_v2 = vld [vmem:[#allocation5] sm:$0xff] }
  0x5b   : > { %414 = vmatprep.subr.bf16.mxu0 %v648_v0  ;;  %411 = vmatprep.mubr.msk.f32.mxu0 %vm649_vm0, %v650_v1  ;;  %v197_v3 = vld [vmem:[#allocation5 + $0x8] sm:$0xff]  ;;  %v198_v4 = vld [vmem:[#allocation5 + $0x10] sm:$0xff]  ;;  %v199_v6 = vld [vmem:[#allocation5 + $0x18] sm:$0xff]  ;;  %vm200_vm1 = vcmask 261120   ;;  %s395_s17 = sshll.u32 %s634_s12, 7  ;;  %s194_s19 = scalar_lea.vmem [#allocation7], %s390_s8 }
  0x5c   : > { %v415_v5 = vpack.c.bf16 %v197_v3, %v196_v2  ;;  %v418_v7 = vpack.c.bf16 %v199_v6, %v198_v4  ;;  %v195_v8 = vld [vmem:[%s170_s16] sm:$0xff]  ;;  %s291_s21 = sshll.u32 %s194_s19, 4  ;;  %vm274_vm2 = vcmask 523264   ;;  %s832_s6 = scalar_lea.hbm %s883_s2, %s395_s17  ;;  %s834_s21 = int_to_ptr.vmem [resolvable:$true] %s291_s21 }
  0x5d   : > { %s277_s7 = scalar_lea.sflag [#allocation4], %s816_s18  ;;  %s556_s24 = scalar_lea.vmem %s834_s21, 128 }
  0x5e   : > { %416 = vmatpush3.bf16.msra.mxu0 %v415_v5  ;;  %p557_p13 = scmp.ne.s32.totalorder %s834_s21, %s556_s24  ;;  %s651_s12 = smov [#allocation7]  }
  0x5f   : > { %417 = vmatprep.subr.bf16.mxu0 %v648_v0  ;;  %s560_s22 = sshll.u32 %s651_s12, 4  ;;  %s561_s22 = int_to_ptr.vmem [resolvable:$false] %s560_s22 }
  0x60   : > { %p558_p6 = pnand %p557_p13, %p763_p10  ;;  %s562_s27 = scalar_lea.vmem %s561_s22, 256 }
  0x61   : > { %p563_p12 = scmp.lt.s32.totalorder %s834_s21, %s561_s22  ;;  %p564_p11 = scmp.lt.s32.totalorder %s562_s27, %s556_s24 }
  0x62   : > { %419 = vmatpush3.bf16.msra.mxu0 %v418_v7  ;;  %p559_p8 = pneg %p558_p6 }
  0x63   : > { %p565_p0 = por %p564_p11, %p563_p12 }
  0x65   : > { %412 = vmatmul.mubr.msk.f32.vlgmr.msra.gmra.mrb[0].mxu0 %vm200_vm1, %v195_v8  ;;  %p566_p5 = pnand %p565_p0, %p559_p8 }
 0x138   : > { %v270_v9 = vpop.f32.mrb[0].mxu0 }
 0x139   : > { %275 = vst.msk [vmem:[%s194_s19] sm:$0xff] %vm274_vm2, %v270_v9  ;;  %v413_v10 = vpop.f32.mrb[1].mxu0 }
 0x13a   : > { %569 = shalt.err (!%p566_p5)
}
 0x13b   : > { %s570_s23 = scalar_lea.hbm %s832_s6, 128  ;;  %s574_s3 = scalar_lea.hbm %s883_s2, 256 }
 0x13c   : > { %p571_p9 = scmp.ne.s32.totalorder %s832_s6, %s570_s23  ;;  %p575_p7 = scmp.lt.u32.totalorder %s832_s6, %s883_s2 }
 0x13d   : > { %p576_p3 = scmp.lt.u32.totalorder %s574_s3, %s570_s23  ;;  %p578_p13 = scmp.lt.u32.totalorder %s570_s23, %s832_s6 }
 0x13e   : > { %p572_p1 = pnand %p571_p9, %p763_p10 }
 0x13f   : > { %p577_p4 = por %p576_p3, %p575_p7 }
 0x140   : > { %p573_p2 = pneg %p572_p1 }
 0x141   : > { %p579_p6 = por %p578_p13, %p577_p4 }
 0x143   : > { %p580_p8 = pnand %p579_p6, %p573_p2 }
 0x145   : > { %583 = shalt.err (!%p580_p8)
}
 0x146   : > { %426 = dma.vmem_to_hbm [thread:$0]  (%p763_p10), %s834_s21, 128, %s832_s6, %s277_s7  }
 0x147 PF: > { %s303_s15 = sand.u32 1, %s622_s9   ;;  %p901_p12 = scmp.ne.s32.totalorder %s891_s20, 0 }
 0x148   : > { %p902_p11 = scmp.ge.s32.totalorder %s642_s14, 2  ;;  %s304_s16 = scalar_lea.sflag [#allocation4], %s303_s15 }
 0x14a   : > { %p437_p0 = pnand %p902_p11, %p901_p12 }
 0x14c   : > { %617 = dma.done.wait (!%p437_p0), %s304_s16, 128  }
 0x14d   : > { %619 = vsyncadd (!%p437_p0), %s304_s16, 4294967168  ;;  %s19_s14 = sadd.s32 1, %s642_s14   ;;  %s903_s9 = smov %s626_s10 }
 0x14e   : > { %p16_p5 = scmp.ge.s32.totalorder %s19_s14, 4   ;;  %s904_s10 = smov %s630_s11 }
 0x14f   : > { %s905_s11 = smov %s772_s28  ;;  %s906_s12 = smov %s638_s13 }
 0x150   : > { %s907_s13 = smov %s909_s25  ;;  %18 = sbr.rel (!%p16_p5) target bundleno = 7 (0x7), region = 78 }
 0x157   :  { %309 = vsyncpa [#allocation3], 1 }
 0x158   :  { %311 = vsyncpa [#allocation3 + $0x1], 1 }
 0x159   :  { %312 = vsyncpa [#allocation6], 1 }
 0x15a   :  { %313 = vsyncpa [#allocation4], 1 }
 0x15b   :  { %315 = vsyncpa [#allocation4 + $0x1], 1 }

</bundles_post_ra>
